<compile_context>
chip_gen: v5e
topology: v5e:2x2
jax: 0.10.0
libtpu: 0.0.40
codegen_flags: <defaults>
</compile_context>

<pallas_src>
import functools

import jax
import jax.numpy as jnp
from jax.experimental import pallas as pl
from jax.experimental.pallas import tpu as pltpu


# ---------------------------------------------------------------------------
# Parameter setup (mirrors PositionalEncoding.__init__)
# ---------------------------------------------------------------------------
def _make_positional_table(num_hiddens: int, max_len: int = 1000) -> jnp.ndarray:
    """Returns P of shape (max_len, num_hiddens), float32."""
    positions = jnp.arange(max_len, dtype=jnp.float32).reshape(-1, 1)          # (max_len, 1)
    div = jnp.power(
        10000.0,
        jnp.arange(0, num_hiddens, 2, dtype=jnp.float32) / num_hiddens,
    )                                                                            # (ceil(H/2),)
    angles = positions / div                                                     # (max_len, ceil(H/2))
    P = jnp.zeros((max_len, num_hiddens), dtype=jnp.float32)
    P = P.at[:, 0::2].set(jnp.sin(angles))
    P = P.at[:, 1::2].set(jnp.cos(angles)[:, : num_hiddens // 2])
    return P


# ---------------------------------------------------------------------------
# Kernel body: plain 2-D add (shape-matched on the tiled path; P broadcasts
# over the leading batch dim on the single-block path)
# ---------------------------------------------------------------------------
def _add_pe_kernel(x_ref, p_ref, o_ref):
    o_ref[...] = x_ref[...] + p_ref[...]
    # TODO(synk): nn.Dropout(p) with p == 0 is the identity, so no dropout mask
    # is applied here (a p > 0 path would need pltpu.prng_* masking).


# ---------------------------------------------------------------------------
# Per-generation tiling / VMEM config
# ---------------------------------------------------------------------------
@functools.lru_cache(maxsize=None)
def _hw_config():
    """Returns (max_block_bytes, vmem_limit_bytes) for the local TPU generation."""
    vmem_cap = 128 << 20
    try:
        info = pltpu.get_tpu_info()
        vmem_cap = int(getattr(info, "vmem_capacity_bytes", vmem_cap))
    except Exception:
        pass
    if vmem_cap <= (64 << 20):
        # v7x-class: 64 MiB physical VMEM per TC, ~3.2 TB/s HBM. 8 MiB tiles keep
        # the 0.35 us/step overhead <10%; 2 x 8 (x) + 2 x 8 (out) + 1 x 8 (P,
        # single-buffered) = 40 MiB peak, so a 48 MiB limit leaves headroom.
        return 8 << 20, 48 << 20
    # v5e / v6e: 128 MiB physical VMEM. 8 MiB tiles are already well past the
    # roofline knee on v6e and harmless on v5e; 64 MiB limit overrides the
    # 16/32 MiB scoped defaults with lots of slack.
    return 8 << 20, 64 << 20


def _choose_tiling(flat: int, itemsize: int, max_block_bytes: int):
    """Pick (lanes, rows, row_tile, ragged) maximizing tile size.

    lanes is a multiple of 128 dividing flat; row_tile is either a divisor of
    rows (preferred) or, when rows has no friendly divisor under the byte cap,
    a non-dividing multiple of the native sublane step (ragged last block).
    """
    sub = max(8, 32 // itemsize)        # native sublane step: 8 f32, 16 bf16, 32 int8
    best = None                          # (tile_bytes, lanes, rows, ts, ragged)
    for lanes in (512, 384, 256, 128):
        if lanes > flat or flat % lanes != 0:
            continue
        rows = flat // lanes
        row_bytes = lanes * itemsize
        if rows * row_bytes <= max_block_bytes:
            cand = (rows * row_bytes, lanes, rows, rows, False)   # full extent, never ragged
        else:
            max_ts = (max_block_bytes // row_bytes) // sub * sub
            if max_ts < sub:
                continue
            ts_div = None
            t = sub
            while t <= max_ts:
                if rows % t == 0:
                    ts_div = t
                t += sub
            if ts_div is not None and 2 * ts_div >= max_ts:
                cand = (ts_div * row_bytes, lanes, rows, ts_div, False)
            else:
                cand = (max_ts * row_bytes, lanes, rows, max_ts, True)
        if best is None or cand[0] > best[0]:
            best = cand
    if best is None:
        return None
    return best[1], best[2], best[3], best[4]


# ---------------------------------------------------------------------------
# Pallas paths
# ---------------------------------------------------------------------------
def _forward_tiled(x, P_slice, B, rows, lanes, ts, ragged, donate_x, vmem_limit):
    S, H = P_slice.shape
    dtype = x.dtype
    itemsize = jnp.dtype(dtype).itemsize

    x3 = x.reshape(B, rows, lanes)       # lane-dense view (pure layout, no compute)
    p2 = P_slice.reshape(rows, lanes)

    n_row_tiles = pl.cdiv(rows, ts)

    if n_row_tiles == 1:
        # Single row tile: collapse to a 1-D parallel grid over batch so the
        # v7x core sharder gets an even split (no-op on v5e/v6e).
        grid = (B,)
        x_spec = pl.BlockSpec((pl.Squeezed(), rows, lanes), lambda b: (b, 0, 0))
        p_spec = pl.BlockSpec((rows, lanes), lambda b: (0, 0),
                              pipeline_mode=pl.Buffered(1))
        o_spec = pl.BlockSpec((pl.Squeezed(), rows, lanes), lambda b: (b, 0, 0))
        semantics = ("parallel",)
    else:
        # Outer grid axis walks P tiles, inner axis walks batch -> each P tile is
        # DMA'd once (single-buffered) and stays resident while batches stream by.
        grid = (n_row_tiles, B)
        x_spec = pl.BlockSpec((pl.Squeezed(), ts, lanes), lambda r, b: (b, r, 0))
        p_spec = pl.BlockSpec((ts, lanes), lambda r, b: (r, 0),
                              pipeline_mode=pl.Buffered(1))
        o_spec = pl.BlockSpec((pl.Squeezed(), ts, lanes), lambda r, b: (b, r, 0))
        semantics = ("parallel", "parallel")

    # TODO(synk): re-enable aliasing on ragged grids once masked edge-block
    # writeback on an aliased HBM buffer has been validated on hardware.
    aliases = {0: 0} if (donate_x and not ragged) else {}

    out3 = pl.pallas_call(
        _add_pe_kernel,
        out_shape=jax.ShapeDtypeStruct((B, rows, lanes), dtype),
        grid_spec=pltpu.PrefetchScalarGridSpec(
            num_scalar_prefetch=0,
            grid=grid,
            in_specs=[x_spec, p_spec],
            out_specs=o_spec,
        ),
        compiler_params=pltpu.CompilerParams(
            dimension_semantics=semantics,
            vmem_limit_bytes=vmem_limit,
        ),
        input_output_aliases=aliases,
        cost_estimate=pl.CostEstimate(
            flops=B * rows * lanes,
            transcendentals=0,
            bytes_accessed=(2 * B * rows * lanes + rows * lanes) * itemsize,
        ),
    )(x3, p2)
    return out3.reshape(B, S, H)


def _forward_single_block(x, P_slice, B, flat, donate_x, vmem_limit):
    """Small / awkward (S*H not a multiple of 128) shapes: one whole-array block.

    P is passed as (1, flat) and broadcast over batch *inside* the kernel — no
    HBM-materialized broadcast copy in the wrapper.
    """
    S, H = P_slice.shape
    dtype = x.dtype
    itemsize = jnp.dtype(dtype).itemsize

    x2 = x.reshape(B, flat)
    p2 = P_slice.reshape(1, flat)

    out2 = pl.pallas_call(
        _add_pe_kernel,
        out_shape=jax.ShapeDtypeStruct((B, flat), dtype),
        grid_spec=pltpu.PrefetchScalarGridSpec(
            num_scalar_prefetch=0,
            grid=(1,),
            in_specs=[
                pl.BlockSpec((B, flat), lambda i: (0, 0)),
                pl.BlockSpec((1, flat), lambda i: (0, 0)),
            ],
            out_specs=pl.BlockSpec((B, flat), lambda i: (0, 0)),
        ),
        compiler_params=pltpu.CompilerParams(
            dimension_semantics=("arbitrary",),
            vmem_limit_bytes=vmem_limit,
        ),
        input_output_aliases={0: 0} if donate_x else {},
        cost_estimate=pl.CostEstimate(
            flops=B * flat,
            transcendentals=0,
            bytes_accessed=(2 * B + 1) * flat * itemsize,
        ),
    )(x2, p2)
    return out2.reshape(B, S, H)


# ---------------------------------------------------------------------------
# Public wrapper (forward pass of PositionalEncoding, dropout p=0 == identity)
# ---------------------------------------------------------------------------
_SMALL_FALLBACK_BYTES = 2 << 20      # below this a fused XLA add beats kernel launch
_SINGLE_BLOCK_MAX_BYTES = 4 << 20


def positional_encoding_forward(x: jnp.ndarray, P_full: jnp.ndarray, *,
                                allow_xla_small_fallback: bool = True,
                                donate_x: bool = False,
                                max_block_bytes: int | None = None) -> jnp.ndarray:
    """x: (B, S, H); P_full: (max_len, H). Returns x + P[:S].

    donate_x=True aliases the output onto x's HBM buffer (1/3 less HBM traffic);
    only set it when x is genuinely dead after this call (e.g. jit donate_argnums),
    otherwise XLA's defensive copy neutralizes the saving.  For bandwidth-bound
    workloads, running x (and therefore P) in bf16 halves wall-clock.
    """
    B, S, H = x.shape
    max_len = P_full.shape[0]
    if S > max_len:
        raise ValueError(f"sequence length {S} exceeds positional table max_len {max_len}")

    P_slice = P_full[:S, :].astype(x.dtype)
    itemsize = jnp.dtype(x.dtype).itemsize
    flat = S * H
    total_bytes = B * flat * itemsize

    if allow_xla_small_fallback and total_bytes < _SMALL_FALLBACK_BYTES:
        return x + P_slice[None, :, :]

    tile_cap, vmem_limit = _hw_config()
    if max_block_bytes is not None:
        tile_cap = max_block_bytes

    tiling = _choose_tiling(flat, itemsize, tile_cap)
    if tiling is not None:
        lanes, rows, ts, ragged = tiling
        return _forward_tiled(x, P_slice, B, rows, lanes, ts, ragged, donate_x, vmem_limit)

    if total_bytes <= _SINGLE_BLOCK_MAX_BYTES:
        return _forward_single_block(x, P_slice, B, flat, donate_x, vmem_limit)

    # TODO(synk): no lane-dense Pallas tiling for large arrays with S*H % 128 != 0;
    # fall back to the fused XLA add (correct, just not a custom kernel).
    return x + P_slice[None, :, :]


if __name__ == "__main__":
    key = jax.random.PRNGKey(0)
    k1, k2, k3, k4 = jax.random.split(key, 4)

    # 1) The module's shape (batch=2, num_steps=8, encoding_dim=32), forced
    #    through the Pallas kernel with the aliased (donated) output path.
    batch, num_steps, encoding_dim = 2, 8, 32
    P_full = _make_positional_table(encoding_dim, max_len=1000)
    x = jax.random.normal(k1, (batch, num_steps, encoding_dim), dtype=jnp.float32)
    ref = x + P_full[None, :num_steps, :]        # reference BEFORE the aliased call
    out = positional_encoding_forward(x, P_full, allow_xla_small_fallback=False,
                                      donate_x=True)
    out = jax.block_until_ready(out)
    assert out.shape == (batch, num_steps, encoding_dim)
    assert jnp.allclose(out, ref, atol=1e-6), "mismatch vs reference (base shape)"

    # 2) Multi-row-tile grid with a ragged final block (tile cap forced small so
    #    rows=66 has no friendly divisor and the cdiv grid path is exercised).
    P2 = _make_positional_table(128, max_len=512)
    x2 = jax.random.normal(k2, (2, 264, 128), dtype=jnp.float32)
    ref2 = x2 + P2[None, :264, :]
    out2 = positional_encoding_forward(x2, P2, allow_xla_small_fallback=False,
                                       max_block_bytes=32 * 1024)
    out2 = jax.block_until_ready(out2)
    assert jnp.allclose(out2, ref2, atol=1e-6), "mismatch vs reference (ragged tiles)"

    # 3) bf16 end-to-end (halves HBM bytes), single row tile -> 1-D batch grid.
    P3 = _make_positional_table(256, max_len=256)
    x3 = jax.random.normal(k3, (4, 128, 256), dtype=jnp.float32).astype(jnp.bfloat16)
    ref3 = x3 + P3[None, :128, :].astype(jnp.bfloat16)
    out3 = positional_encoding_forward(x3, P3, allow_xla_small_fallback=False)
    out3 = jax.block_until_ready(out3)
    assert jnp.allclose(out3.astype(jnp.float32), ref3.astype(jnp.float32),
                        atol=1e-2), "mismatch vs reference (bf16)"

    # 4) S*H not a multiple of 128 -> single-block path, in-kernel P broadcast.
    P4 = _make_positional_table(24, max_len=64)
    x4 = jax.random.normal(k4, (2, 7, 24), dtype=jnp.float32)
    ref4 = x4 + P4[None, :7, :]
    out4 = positional_encoding_forward(x4, P4, allow_xla_small_fallback=False)
    out4 = jax.block_until_ready(out4)
    assert jnp.allclose(out4, ref4, atol=1e-6), "mismatch vs reference (single block)"

    print("KERNEL_OK")
</pallas_src>

<mosaic_0001>
module attributes {stable_mosaic.version = 11 : i64} {
  func.func @_add_pe_kernel(%arg0: i32, %arg1: memref<1x1x256xf32, #tpu.memory_space<vmem>>, %arg2: memref<1x256xf32, #tpu.memory_space<vmem>>, %arg3: memref<1x1x256xf32, #tpu.memory_space<vmem>>) attributes {dimension_semantics = [#tpu.dimension_semantics<parallel>], iteration_bounds = array<i64: 2>, scalar_prefetch = 0 : i64, scratch_operands = 0 : i64, tpu.core_type = #tpu.core_type<tc>, window_params = [{transform_indices = @transform_0, window_bounds = array<i64: 1, 1, 256>}, {pipeline_mode = #tpu.pipeline_mode<synchronous>, transform_indices = @transform_1, window_bounds = array<i64: 1, 256>}, {transform_indices = @transform_2, window_bounds = array<i64: 1, 1, 256>}]} {
    %c0 = arith.constant 0 : index
    %c0_0 = arith.constant 0 : index
    %c0_1 = arith.constant 0 : index
    %0 = vector.load %arg1[%c0, %c0_0, %c0_1] : memref<1x1x256xf32, #tpu.memory_space<vmem>>, vector<1x1x256xf32>
    %1 = vector.shape_cast %0 : vector<1x1x256xf32> to vector<1x256xf32>
    %c0_2 = arith.constant 0 : index
    %c0_3 = arith.constant 0 : index
    %2 = vector.load %arg2[%c0_2, %c0_3] : memref<1x256xf32, #tpu.memory_space<vmem>>, vector<1x256xf32>
    %3 = arith.addf %1, %2 : vector<1x256xf32>
    %c0_4 = arith.constant 0 : index
    %c0_5 = arith.constant 0 : index
    %c0_6 = arith.constant 0 : index
    %4 = vector.load %arg3[%c0_4, %c0_5, %c0_6] : memref<1x1x256xf32, #tpu.memory_space<vmem>>, vector<1x1x256xf32>
    %5 = vector.shape_cast %4 : vector<1x1x256xf32> to vector<1x256xf32>
    %6 = vector.shape_cast %3 : vector<1x256xf32> to vector<1x1x256xf32>
    tpu.vector_store %arg3[%c0_4, %c0_5, %c0_6], %6 {strides = array<i32>} : memref<1x1x256xf32, #tpu.memory_space<vmem>>, vector<1x1x256xf32>,
    return
  }
  func.func @transform_0(%arg0: i32) -> (i32, i32, i32) {
    %c0_i32 = arith.constant 0 : i32
    %c0_i32_0 = arith.constant 0 : i32
    %c0_i32_1 = arith.constant 0 : i32
    return %arg0, %c0_i32, %c0_i32_0 : i32, i32, i32
  }
  func.func @transform_1(%arg0: i32) -> (i32, i32) {
    %c0_i32 = arith.constant 0 : i32
    %c0_i32_0 = arith.constant 0 : i32
    %c0_i32_1 = arith.constant 0 : i32
    return %c0_i32, %c0_i32_0 : i32, i32
  }
  func.func @transform_2(%arg0: i32) -> (i32, i32, i32) {
    %c0_i32 = arith.constant 0 : i32
    %c0_i32_0 = arith.constant 0 : i32
    %c0_i32_1 = arith.constant 0 : i32
    return %arg0, %c0_i32, %c0_i32_0 : i32, i32, i32
  }
}

</mosaic_0001>

<bundles_post_ra>
// kernel: tpu_custom_call.1
= control target key start
LH: loop header
LB: loop body
LE: loop exit
PB: predicated region body
PF: predicated region fallthrough
CT: control target
= control target key end

     0   :  { %7 = vsyncpa [#allocation3], 0  ;;  %s556_s0 = inlined_call_operand.hbm [shape: f32[2,1,256], index: 0, kind: input, shape index: {}, may-alias: {0,2}]   ;;  %s557_s1 = inlined_call_operand.vmem [shape: f32[1,256], index: 1, kind: input, shape index: {}]   ;;  %s558_s2 = inlined_call_operand.hbm [shape: f32[2,1,256], index: 2, kind: output, shape index: {}, may-alias: {0,2}]  }
   0x1   :  { %9 = vsyncpa [#allocation3 + $0x1], 0 }
   0x2   :  { %10 = vsyncpa [#allocation4], 0 }
   0x3   :  { %12 = vsyncpa [#allocation4 + $0x1], 0  ;;  %s426_s9 = smov 0   ;;  %s428_s10 = smov 0  }
   0x4   :  { %s430_s11 = smov 0   ;;  %s432_s12 = smov 0  }
   0x5 LB: > { %s447_s13 = sadd.s32 4294967295, %s409_s12   ;;  %s255_s14 = sadd.s32 4294967294, %s409_s12   ;;  %s409_s12 = sphi %s432_s12, %s568_s12   ;;  %s405_s11 = sphi %s430_s11, %s567_s11   ;;  %s401_s10 = sphi %s428_s10, %s566_s10   ;;  %s397_s9 = sphi %s426_s9, %s565_s9  }
   0x6   : > { %s451_s15 = sadd.s32 1, %s409_s12   ;;  %s25_s16 = sadd.s32 1, %s405_s11 }
   0x7   : > { %s22_s17 = ssub.s32 %s409_s12, %s451_s15  ;;  %p32_p0 = scmp.ne.s32.totalorder %s405_s11, %s401_s10 }
   0x8   : > { %p23_p1 = scmp.eq.s32.totalorder %s22_s17, 0  ;;  %p33_p2 = scmp.eq.s32.totalorder %s409_s12, 0 }
   0x9   : > { %p38_p3 = scmp.ne.s32.totalorder %s401_s10, %s397_s9  ;;  %p39_p4 = scmp.eq.s32.totalorder %s447_s13, 0 }
   0xa   : > { %s463_s18 = scalar_select %p23_p1, %s405_s11, %s25_s16  }
   0xb   : > { %p465_p5 = por %p33_p2, %p32_p0  ;;  %p469_p6 = por %p39_p4, %p38_p3 }
   0xc   : > { %p83_p7 = scmp.eq.s32.totalorder %s447_s13, 1  ;;  %p89_p8 = scmp.eq.s32.totalorder %s255_s14, 1 }
   0xd   : > { %p279_p10 = scmp.lt.s32.totalorder %s409_s12, 2  ;;  %s112_s23 = sand.u32 1, %s405_s11  }
   0xe   : > { %p476_p11 = por %p83_p7, %p32_p0  ;;  %p480_p12 = por %p89_p8, %p38_p3 }
   0xf   : > { %s259_s24 = sshll.u32 %s409_s12, 1  ;;  %s258_s25 = sshll.u32 %s112_s23, 1 }
  0x10   : > { %s120_s28 = scalar_lea.hbm %s556_s0, %s259_s24  ;;  %s116_s30 = scalar_lea.vmem [#allocation2], %s258_s25 }
  0x11   : > { %s122_s29 = sshll.u32 %s120_s28, 4  ;;  %s124_s3 = sshll.u32 %s116_s30, 4  ;;  %s123_s29 = int_to_ptr.hbm [resolvable:$true] %s122_s29  ;;  %s125_s3 = int_to_ptr.vmem [resolvable:$true] %s124_s3 }
  0x12   : > { %p491_p13 = pnand %p279_p10, %p465_p5  ;;  %p260_p0 = scmp.ge.s32.totalorder %s409_s12, 1 }
  0x13   : > { %p129_p1 = scmp.lt.s32.totalorder %s409_s12, 3  ;;  %s113_s5 = scalar_lea.sflag [#allocation3], %s112_s23 }
  0x14   : > { %s313_s6 = sshra.s32 %s123_s29, 4  ;;  %p317_p3 = pneg %p491_p13  ;;  %s314_s6 = int_to_ptr.hbm [resolvable:$true] %s313_s6 }
  0x15   : > { %s315_s7 = scalar_lea.hbm %s314_s6, 2  ;;  %s320_s16 = scalar_lea.hbm %s556_s0, 4 }
  0x16   : > { %p316_p2 = scmp.ne.s32.totalorder %s314_s6, %s315_s7  ;;  %p321_p5 = scmp.lt.s32.totalorder %s314_s6, %s556_s0 }
  0x17   : > { %p322_p8 = scmp.lt.s32.totalorder %s320_s16, %s315_s7 }
  0x18   : > { %p318_p4 = pnand %p317_p3, %p316_p2 }
  0x19   : > { %p323_p10 = por %p322_p8, %p321_p5 }
  0x1a   : > { %p319_p7 = pneg %p318_p4 }
  0x1c   : > { %p324_p9 = pnand %p323_p10, %p319_p7 }
  0x1e   : > { %327 = shalt.err (!%p324_p9)
}
  0x1f   : > { %274 = dma.hbm_to_vmem [thread:$0]  (!%p491_p13), %s123_s29, 32, %s125_s3, %s113_s5  }
  0x20   : > { %p130_p2 = pnand %p260_p0, %p129_p1 }
  0x21   : > { %s512_s23 = sand.u32 (!%p130_p2), 1, %s401_s10  }
  0x22   : > { %133 = sbr.rel (%p130_p2) target bundleno = 55 (0x37), region = 28  ;;  %s261_s24 = sshll.u32 (!%p130_p2), %s512_s23, 1 }
  0x23   : > { %s136_s25 = scalar_lea.sflag (!%p130_p2), [#allocation3], %s512_s23  ;;  %s139_s26 = scalar_lea.vmem (!%p130_p2), [#allocation2], %s261_s24 }
  0x27   : > { %388 = dma.done.wait (%p469_p6), %s136_s25, 32  }
  0x28   : > { %390 = vsyncadd (%p469_p6), %s136_s25, 4294967264  ;;  %s264_s27 = sshll.u32 %s447_s13, 1  ;;  %v164_v0 = vlaneseq  ;;  %s160_s3 = scalar_lea.vmem [#allocation5], %s261_s24  ;;  %v161_v1 = vld [vmem:[%s139_s26] sm:$0x3] }
  0x29   : > { %s180_s30 = scalar_lea.hbm %s558_s2, %s264_s27  ;;  %s182_s4 = sshll.u32 %s160_s3, 4  ;;  %v162_v2 = vld [vmem:[%s557_s1] sm:$0x3]  ;;  %s183_s4 = int_to_ptr.vmem [resolvable:$true] %s182_s4 }
  0x2a   : > { %s184_s5 = sshll.u32 %s180_s30, 4  ;;  %vm166_vm0 = vcmp.lt.s32.totalorder %v164_v0, 256  ;;  %v163_v3 = vadd.f32 %v162_v2, %v161_v1  ;;  %s170_s13 = scalar_lea.sflag [#allocation4], %s512_s23  ;;  %s185_s5 = int_to_ptr.hbm [resolvable:$true] %s184_s5 }
  0x2b   : > { %s357_s20 = sshra.s32 %s185_s5, 4  ;;  %s363_s17 = scalar_lea.hbm %s558_s2, 4  ;;  %s358_s20 = int_to_ptr.hbm [resolvable:$true] %s357_s20 }
  0x2c   : > { %168 = vst.msk [vmem:[%s160_s3] sm:$0x3] %vm166_vm0, %v163_v3  ;;  %s359_s8 = scalar_lea.hbm %s358_s20, 2  ;;  %p364_p0 = scmp.lt.s32.totalorder %s358_s20, %s558_s2 }
  0x2d   : > { %p360_p6 = scmp.ne.s32.totalorder %s358_s20, %s359_s8  ;;  %p365_p1 = scmp.lt.s32.totalorder %s363_s17, %s359_s8 }
  0x2f   : > { %p361_p9 = pnand %p360_p6, %p476_p11  ;;  %p366_p3 = por %p365_p1, %p364_p0 }
  0x31   : > { %p362_p13 = pneg %p361_p9 }
  0x33   : > { %p367_p4 = pnand %p366_p3, %p362_p13 }
  0x35   : > { %370 = shalt.err (!%p367_p4)
}
  0x36   : > { %269 = dma.vmem_to_hbm [thread:$0]  (%p476_p11), %s183_s4, 32, %s185_s5, %s170_s13  }
  0x37 PF: > { %s196_s23 = sand.u32 1, %s397_s9   ;;  %p564_p7 = scmp.ge.s32.totalorder %s409_s12, 2 }
  0x38   : > { %s197_s25 = scalar_lea.sflag [#allocation4], %s196_s23 }
  0x39   : > { %p276_p5 = pnand %p564_p7, %p480_p12 }
  0x3b   : > { %p277_p8 = pneg %p276_p5 }
  0x3d   : > { %392 = dma.done.wait (%p277_p8), %s197_s25, 32  }
  0x3e   : > { %394 = vsyncadd (%p277_p8), %s197_s25, 4294967264  ;;  %p15_p10 = scmp.ge.s32.totalorder %s451_s15, 4   ;;  %s565_s9 = smov %s401_s10 }
  0x3f   : > { %s566_s10 = smov %s405_s11  ;;  %s567_s11 = smov %s463_s18 }
  0x40   : > { %s568_s12 = smov %s451_s15  ;;  %17 = sbr.rel (!%p15_p10) target bundleno = 5 (0x5), region = 73 }
  0x45   :  { %203 = vsyncpa [#allocation3], 1 }
  0x46   :  { %205 = vsyncpa [#allocation3 + $0x1], 1 }
  0x47   :  { %206 = vsyncpa [#allocation4], 1 }
  0x48   :  { %208 = vsyncpa [#allocation4 + $0x1], 1 }

</bundles_post_ra>
